<compile_context>
chip_gen: v7x
topology: tpu7x:2x2x1
jax: 0.10.0
libtpu: 0.0.40
codegen_flags: <defaults>
</compile_context>

<pallas_src>
import jax
import jax.numpy as jnp
import numpy as np
from jax.experimental import pallas as pl
from jax.experimental.pallas import tpu as pltpu

_LANE = 128
_SUBLANE = 8
_MAX_BATCH_TILE = 512
_VMEM_BUDGET = 12 * 1024 * 1024  # double-buffered working-set target (bytes)


def _round_up(x, m):
    return ((x + m - 1) // m) * m


def _pick_batch_tile(B, T, D, Kmax, x_itemsize):
    """Largest batch tile (multiple of 8, <=512) whose double-buffered working
    set fits comfortably inside the default scoped VMEM on all TPU gens."""
    tb = min(_round_up(max(B, 1), _SUBLANE), _MAX_BATCH_TILE)

    def working_set(t):
        x_blk = t * T * D * x_itemsize          # token tile
        o_blk = T * t * Kmax * 4                # per-head f32 output tiles
        w_blk = T * D * Kmax * 2 + T * Kmax * 4  # resident weights + biases
        return 2 * (x_blk + o_blk) + 2 * w_blk + (1 << 16)

    while tb > _SUBLANE and working_set(tb) > _VMEM_BUDGET:
        tb = max(_SUBLANE, _round_up(tb // 2, _SUBLANE))
    return tb


# ----------------------------- Pallas kernel --------------------------------
def _make_mtl_heads_kernel(T, D, Kmax, TB, B):
    lane_aligned = (D % _LANE == 0)

    def kernel(x_ref, w_ref, b_ref, *o_refs):
        # x_ref:   [TB, T*D]     (tokens tile, all heads, original dtype)
        # w_ref:   [T, D, Kmax]  bf16, resident across all batch tiles
        # b_ref:   [T, 1, Kmax]  f32,  resident across all batch tiles
        # o_refs:  T x [TB, Kmax] f32 head outputs, then [1, 1, 128] f32 flag
        head_refs = o_refs[:-1]
        flag_ref = o_refs[-1]

        # Row-validity mask: the last batch tile may extend past B (OOB reads
        # are stale garbage, OOB writes are dropped), so the finiteness check
        # must only look at real rows.
        row = jax.lax.broadcasted_iota(jnp.int32, (TB, 1), 0) + pl.program_id(0) * TB
        valid = row < B                                         # [TB, 1]

        x_all = None
        if not lane_aligned:
            # D is not a lane multiple: materialize the tile once (small in
            # this regime) and slice values instead of refs.
            x_all = x_ref[...].astype(jnp.bfloat16)

        bad = jnp.zeros((), dtype=jnp.bool_)
        for t in range(T):                      # static unrolled loop over heads
            if lane_aligned:
                # 128-aligned lane slice of the resident tile: no relayout.
                xt = x_ref[:, t * D:(t + 1) * D].astype(jnp.bfloat16)
            else:
                xt = x_all[:, t * D:(t + 1) * D]
            y = jnp.dot(xt, w_ref[t], preferred_element_type=jnp.float32)
            y = y + b_ref[t]                                    # [TB,Kmax] + [1,Kmax]
            head_refs[t][...] = y
            bad = jnp.logical_or(
                bad, jnp.any(jnp.logical_not(jnp.isfinite(y)) & valid))

        flag_ref[...] = jnp.broadcast_to(bad.astype(jnp.float32), flag_ref.shape)

    return kernel


def _fused_heads(x2d, w_stack, b_stack):
    """x2d: [B, T*D] tokens view, w_stack: [T, D, Kmax] bf16, b_stack: [T, 1, Kmax] f32
       -> (out_0 [B,Kmax] f32, ..., out_{T-1}, flag [num_blocks,1,128] f32)."""
    B = x2d.shape[0]
    T, D, Kmax = w_stack.shape
    TB = _pick_batch_tile(B, T, D, Kmax, x2d.dtype.itemsize)
    num_blocks = -(-B // TB)

    kernel = _make_mtl_heads_kernel(T, D, Kmax, TB, B)

    out_shape = tuple(jax.ShapeDtypeStruct((B, Kmax), jnp.float32) for _ in range(T))
    out_shape = out_shape + (jax.ShapeDtypeStruct((num_blocks, 1, _LANE), jnp.float32),)

    out_specs = tuple(pl.BlockSpec((TB, Kmax), lambda b: (b, 0)) for _ in range(T))
    out_specs = out_specs + (pl.BlockSpec((1, 1, _LANE), lambda b: (b, 0, 0)),)

    in_specs = [
        pl.BlockSpec((TB, T * D), lambda b: (b, 0)),      # token tile (all heads at once)
        pl.BlockSpec((T, D, Kmax), lambda b: (0, 0, 0)),  # weights: held resident
        pl.BlockSpec((T, 1, Kmax), lambda b: (0, 0, 0)),  # biases:  held resident
    ]

    cost = pl.CostEstimate(
        flops=2 * T * B * D * Kmax,
        transcendentals=0,
        bytes_accessed=(x2d.size * x2d.dtype.itemsize
                        + w_stack.size * w_stack.dtype.itemsize
                        + b_stack.size * b_stack.dtype.itemsize
                        + T * B * Kmax * 4
                        + num_blocks * _LANE * 4),
    )

    return pl.pallas_call(
        kernel,
        out_shape=out_shape,
        grid=(num_blocks,),
        in_specs=in_specs,
        out_specs=out_specs,
        compiler_params=pltpu.CompilerParams(
            dimension_semantics=("parallel",),
            vmem_limit_bytes=32 * 1024 * 1024),
        cost_estimate=cost,
    )(x2d, w_stack, b_stack)


# --------------------------- module-level wrapper ----------------------------
class MTLHeadsBaselinePallas:
    """Mirrors MTL_heads_baseline: [B, T, D] -> list of T arrays [B, K_t]."""

    def __init__(self, MTL_heads_configs, MTL_feature_dim=128, seed=0):
        self.feature_dim = int(MTL_feature_dim)
        self.configs = [int(k) for k in MTL_heads_configs]
        T = len(self.configs)
        self.kmax = _round_up(max(self.configs), _LANE)   # lane-dense output width

        key = jax.random.PRNGKey(seed)
        self.weights = []   # per-head [D, K] f32 (transposed nn.Linear weight)
        self.biases = []    # per-head [K] f32, zero-initialized (constant_(bias, 0))
        for k_dim in self.configs:
            key, sub = jax.random.split(key)
            bound = float(np.sqrt(6.0 / (self.feature_dim + k_dim)))   # xavier_uniform_
            w_torch = jax.random.uniform(sub, (k_dim, self.feature_dim),
                                         dtype=jnp.float32, minval=-bound, maxval=bound)
            self.weights.append(jnp.transpose(w_torch))                # [D, K]
            self.biases.append(jnp.zeros((k_dim,), dtype=jnp.float32))

        # Fused, lane-padded parameter slabs, built once. Weights in bf16
        # (native MXU path, half the HBM read); biases stay f32 (added post-MXU).
        w_stack = np.zeros((T, self.feature_dim, self.kmax), dtype=np.float32)
        b_stack = np.zeros((T, 1, self.kmax), dtype=np.float32)
        for t, (w, b) in enumerate(zip(self.weights, self.biases)):
            w_stack[t, :, :w.shape[1]] = np.asarray(w)
            b_stack[t, 0, :b.shape[0]] = np.asarray(b)
        self.w_stack = jnp.asarray(w_stack).astype(jnp.bfloat16)   # [T, D, Kmax]
        self.b_stack = jnp.asarray(b_stack)                        # [T, 1, Kmax]

        head_dims = tuple(self.configs)

        def _forward(tokens, w_stack, b_stack):
            B, T_, D_ = tokens.shape
            x2d = tokens.reshape(B, T_ * D_)          # free view of contiguous [B,T,D]
            outs = _fused_heads(x2d, w_stack, b_stack)
            head_outs, flag = outs[:-1], outs[-1]
            bad = jnp.any(flag > 0.0)                 # tiny per-tile flag array
            preds = tuple(head_outs[t][:, :k] for t, k in enumerate(head_dims))
            return preds, bad

        self._forward = jax.jit(_forward)

    def __call__(self, MTL_tokens):
        # MTL_tokens: [B, T, D]
        assert MTL_tokens.ndim == 3
        assert MTL_tokens.shape[1] == len(self.configs)
        assert MTL_tokens.shape[2] == self.feature_dim
        preds, bad = self._forward(MTL_tokens, self.w_stack, self.b_stack)
        # Single deferred host sync for the NaN/Inf guard (matches the PyTorch
        # module's raise-on-nonfinite semantics).
        if bool(bad):
            raise ValueError(
                'Detected NaN or Inf in MTL head output! pls check backbone '
                'model or MTL framework model')
        return list(preds)


# ------------------------------- reference -----------------------------------
def _reference(tokens, weights, biases):
    # Matches the kernel numerics: bf16 inputs/weights, f32 accumulation.
    outs = []
    for idx, (w, b) in enumerate(zip(weights, biases)):
        x = tokens[:, idx, :].astype(jnp.bfloat16).astype(jnp.float32)
        wq = w.astype(jnp.bfloat16).astype(jnp.float32)
        outs.append(x @ wq + b[None, :])
    return outs


if __name__ == "__main__":
    # Primary check: module default feature dim (lane-aligned fast path).
    B, D = 2, 128
    heads = [8, 16, 4]          # K_t per task  -> T = 3 tasks
    T = len(heads)
    key = jax.random.PRNGKey(0)
    tokens = jax.random.normal(key, (B, T, D), dtype=jnp.float32)

    model = MTLHeadsBaselinePallas(heads, MTL_feature_dim=D, seed=0)
    preds = [jax.block_until_ready(p) for p in model(tokens)]
    refs = _reference(tokens, model.weights, model.biases)
    for p, r, k in zip(preds, refs, heads):
        assert p.shape == (B, k), (p.shape, (B, k))
        np.testing.assert_allclose(np.asarray(p), np.asarray(r), rtol=2e-3, atol=2e-3)

    # Secondary check: non-lane-aligned feature dim (fallback slicing path).
    D2 = 32
    tokens2 = jax.random.normal(jax.random.PRNGKey(0), (B, T, D2), dtype=jnp.float32)
    model2 = MTLHeadsBaselinePallas(heads, MTL_feature_dim=D2, seed=0)
    preds2 = [jax.block_until_ready(p) for p in model2(tokens2)]
    refs2 = _reference(tokens2, model2.weights, model2.biases)
    for p, r, k in zip(preds2, refs2, heads):
        assert p.shape == (B, k), (p.shape, (B, k))
        np.testing.assert_allclose(np.asarray(p), np.asarray(r), rtol=2e-3, atol=2e-3)

    # The fused in-kernel NaN/Inf guard must trigger the module's ValueError.
    bad_tokens = tokens.at[0, 1, 5].set(jnp.nan)
    raised = False
    try:
        model(bad_tokens)
    except ValueError:
        raised = True
    assert raised, "in-kernel NaN/Inf guard did not trigger"

    print("KERNEL_OK")
</pallas_src>

<mosaic_0001>
module attributes {stable_mosaic.version = 11 : i64} {
  func.func @kernel(%arg0: i32, %arg1: memref<8x384xf32, #tpu.memory_space<vmem>>, %arg2: memref<3x128x128xbf16, #tpu.memory_space<vmem>>, %arg3: memref<3x1x128xf32, #tpu.memory_space<vmem>>, %arg4: memref<8x128xf32, #tpu.memory_space<vmem>>, %arg5: memref<8x128xf32, #tpu.memory_space<vmem>>, %arg6: memref<8x128xf32, #tpu.memory_space<vmem>>, %arg7: memref<1x1x128xf32, #tpu.memory_space<vmem>>) attributes {dimension_semantics = [#tpu.dimension_semantics<parallel>], iteration_bounds = array<i64: 1>, scalar_prefetch = 0 : i64, scratch_operands = 0 : i64, tpu.core_type = #tpu.core_type<tc>, window_params = [{transform_indices = @transform_0, window_bounds = array<i64: 8, 384>}, {pipeline_mode = #tpu.pipeline_mode<synchronous>, transform_indices = @transform_1, window_bounds = array<i64: 3, 128, 128>}, {pipeline_mode = #tpu.pipeline_mode<synchronous>, transform_indices = @transform_2, window_bounds = array<i64: 3, 1, 128>}, {transform_indices = @transform_3, window_bounds = array<i64: 8, 128>}, {transform_indices = @transform_4, window_bounds = array<i64: 8, 128>}, {transform_indices = @transform_5, window_bounds = array<i64: 8, 128>}, {transform_indices = @transform_6, window_bounds = array<i64: 1, 1, 128>}]} {
    %0 = tpu.iota {dimensions = array<i32: 0>} : vector<8x1xi32>
    %c8_i32 = arith.constant 8 : i32
    %1 = arith.muli %arg0, %c8_i32 : i32
    %2 = vector.broadcast %1 : i32 to vector<8x1xi32>
    %3 = arith.addi %0, %2 : vector<8x1xi32>
    %c2_i32 = arith.constant 2 : i32
    %4 = vector.broadcast %c2_i32 : i32 to vector<8x1xi32>
    %5 = arith.cmpi slt, %3, %4 : vector<8x1xi32>
    %c0 = arith.constant 0 : index
    %c0_0 = arith.constant 0 : index
    %6 = vector.load %arg1[%c0, %c0_0] : memref<8x384xf32, #tpu.memory_space<vmem>>, vector<8x128xf32>
    %7 = arith.truncf %6 : vector<8x128xf32> to vector<8x128xbf16>
    %c0_1 = arith.constant 0 : index
    %c0_2 = arith.constant 0 : index
    %c0_3 = arith.constant 0 : index
    %8 = vector.load %arg2[%c0_1, %c0_2, %c0_3] : memref<3x128x128xbf16, #tpu.memory_space<vmem>>, vector<1x128x128xbf16>
    %9 = vector.shape_cast %8 : vector<1x128x128xbf16> to vector<128x128xbf16>
    %cst = arith.constant dense<0.000000e+00> : vector<8x128xf32>
    %10 = tpu.matmul %7, %9, %cst {dimension_numbers = #tpu.dot_dimension_numbers<[1], [0], [0], [1], [0, 0, 1, 1], [], []>} : vector<8x128xbf16>, vector<128x128xbf16>, vector<8x128xf32> -> vector<8x128xf32>
    %c0_4 = arith.constant 0 : index
    %c0_5 = arith.constant 0 : index
    %c0_6 = arith.constant 0 : index
    %11 = vector.load %arg3[%c0_4, %c0_5, %c0_6] : memref<3x1x128xf32, #tpu.memory_space<vmem>>, vector<1x1x128xf32>
    %12 = vector.shape_cast %11 : vector<1x1x128xf32> to vector<1x128xf32>
    %13 = vector.broadcast %12 : vector<1x128xf32> to vector<8x128xf32>
    %14 = arith.addf %10, %13 : vector<8x128xf32>
    %c0_7 = arith.constant 0 : index
    %c0_8 = arith.constant 0 : index
    %15 = vector.load %arg4[%c0_7, %c0_8] : memref<8x128xf32, #tpu.memory_space<vmem>>, vector<8x128xf32>
    tpu.vector_store %arg4[%c0_7, %c0_8], %14 {strides = array<i32>} : memref<8x128xf32, #tpu.memory_space<vmem>>, vector<8x128xf32>,
    %16 = tpu.weird %14 : vector<8x128xf32> -> vector<8x128xi1>
    %cst_9 = arith.constant dense<true> : vector<8x128xi1>
    %17 = arith.xori %16, %cst_9 : vector<8x128xi1>
    %cst_10 = arith.constant dense<true> : vector<8x128xi1>
    %18 = arith.xori %17, %cst_10 : vector<8x128xi1>
    %19 = vector.broadcast %5 : vector<8x1xi1> to vector<8x128xi1>
    %20 = arith.andi %18, %19 : vector<8x128xi1>
    %cst_11 = arith.constant 1.000000e+00 : f32
    %cst_12 = arith.constant 0.000000e+00 : f32
    %21 = vector.broadcast %cst_11 : f32 to vector<8x128xf32>
    %22 = vector.broadcast %cst_12 : f32 to vector<8x128xf32>
    %23 = arith.select %20, %21, %22 : vector<8x128xi1>, vector<8x128xf32>
    %24 = vector.shape_cast %23 : vector<8x128xf32> to vector<1x8x128xf32>
    %cst_13 = arith.constant dense<0xFF800000> : vector<1xf32>
    %25 = vector.multi_reduction <maximumf>, %24, %cst_13 [1, 2] : vector<1x8x128xf32> to vector<1xf32>
    %26 = vector.shape_cast %25 : vector<1xf32> to vector<1x1x1xf32>
    %27 = vector.extract %26[0, 0, 0] : f32 from vector<1x1x1xf32>
    %cst_14 = arith.constant 0.000000e+00 : f32
    %28 = arith.cmpf ogt, %27, %cst_14 : f32
    %false = arith.constant false
    %29 = arith.ori %false, %28 : i1
    %c0_15 = arith.constant 0 : index
    %c128 = arith.constant 128 : index
    %30 = vector.load %arg1[%c0_15, %c128] : memref<8x384xf32, #tpu.memory_space<vmem>>, vector<8x128xf32>
    %31 = arith.truncf %30 : vector<8x128xf32> to vector<8x128xbf16>
    %c1 = arith.constant 1 : index
    %c0_16 = arith.constant 0 : index
    %c0_17 = arith.constant 0 : index
    %32 = vector.load %arg2[%c1, %c0_16, %c0_17] : memref<3x128x128xbf16, #tpu.memory_space<vmem>>, vector<1x128x128xbf16>
    %33 = vector.shape_cast %32 : vector<1x128x128xbf16> to vector<128x128xbf16>
    %cst_18 = arith.constant dense<0.000000e+00> : vector<8x128xf32>
    %34 = tpu.matmul %31, %33, %cst_18 {dimension_numbers = #tpu.dot_dimension_numbers<[1], [0], [0], [1], [0, 0, 1, 1], [], []>} : vector<8x128xbf16>, vector<128x128xbf16>, vector<8x128xf32> -> vector<8x128xf32>
    %c1_19 = arith.constant 1 : index
    %c0_20 = arith.constant 0 : index
    %c0_21 = arith.constant 0 : index
    %35 = vector.load %arg3[%c1_19, %c0_20, %c0_21] : memref<3x1x128xf32, #tpu.memory_space<vmem>>, vector<1x1x128xf32>
    %36 = vector.shape_cast %35 : vector<1x1x128xf32> to vector<1x128xf32>
    %37 = vector.broadcast %36 : vector<1x128xf32> to vector<8x128xf32>
    %38 = arith.addf %34, %37 : vector<8x128xf32>
    %c0_22 = arith.constant 0 : index
    %c0_23 = arith.constant 0 : index
    %39 = vector.load %arg5[%c0_22, %c0_23] : memref<8x128xf32, #tpu.memory_space<vmem>>, vector<8x128xf32>
    tpu.vector_store %arg5[%c0_22, %c0_23], %38 {strides = array<i32>} : memref<8x128xf32, #tpu.memory_space<vmem>>, vector<8x128xf32>,
    %40 = tpu.weird %38 : vector<8x128xf32> -> vector<8x128xi1>
    %cst_24 = arith.constant dense<true> : vector<8x128xi1>
    %41 = arith.xori %40, %cst_24 : vector<8x128xi1>
    %cst_25 = arith.constant dense<true> : vector<8x128xi1>
    %42 = arith.xori %41, %cst_25 : vector<8x128xi1>
    %43 = vector.broadcast %5 : vector<8x1xi1> to vector<8x128xi1>
    %44 = arith.andi %42, %43 : vector<8x128xi1>
    %cst_26 = arith.constant 1.000000e+00 : f32
    %cst_27 = arith.constant 0.000000e+00 : f32
    %45 = vector.broadcast %cst_26 : f32 to vector<8x128xf32>
    %46 = vector.broadcast %cst_27 : f32 to vector<8x128xf32>
    %47 = arith.select %44, %45, %46 : vector<8x128xi1>, vector<8x128xf32>
    %48 = vector.shape_cast %47 : vector<8x128xf32> to vector<1x8x128xf32>
    %cst_28 = arith.constant dense<0xFF800000> : vector<1xf32>
    %49 = vector.multi_reduction <maximumf>, %48, %cst_28 [1, 2] : vector<1x8x128xf32> to vector<1xf32>
    %50 = vector.shape_cast %49 : vector<1xf32> to vector<1x1x1xf32>
    %51 = vector.extract %50[0, 0, 0] : f32 from vector<1x1x1xf32>
    %cst_29 = arith.constant 0.000000e+00 : f32
    %52 = arith.cmpf ogt, %51, %cst_29 : f32
    %53 = arith.ori %29, %52 : i1
    %c0_30 = arith.constant 0 : index
    %c256 = arith.constant 256 : index
    %54 = vector.load %arg1[%c0_30, %c256] : memref<8x384xf32, #tpu.memory_space<vmem>>, vector<8x128xf32>
    %55 = arith.truncf %54 : vector<8x128xf32> to vector<8x128xbf16>
    %c2 = arith.constant 2 : index
    %c0_31 = arith.constant 0 : index
    %c0_32 = arith.constant 0 : index
    %56 = vector.load %arg2[%c2, %c0_31, %c0_32] : memref<3x128x128xbf16, #tpu.memory_space<vmem>>, vector<1x128x128xbf16>
    %57 = vector.shape_cast %56 : vector<1x128x128xbf16> to vector<128x128xbf16>
    %cst_33 = arith.constant dense<0.000000e+00> : vector<8x128xf32>
    %58 = tpu.matmul %55, %57, %cst_33 {dimension_numbers = #tpu.dot_dimension_numbers<[1], [0], [0], [1], [0, 0, 1, 1], [], []>} : vector<8x128xbf16>, vector<128x128xbf16>, vector<8x128xf32> -> vector<8x128xf32>
    %c2_34 = arith.constant 2 : index
    %c0_35 = arith.constant 0 : index
    %c0_36 = arith.constant 0 : index
    %59 = vector.load %arg3[%c2_34, %c0_35, %c0_36] : memref<3x1x128xf32, #tpu.memory_space<vmem>>, vector<1x1x128xf32>
    %60 = vector.shape_cast %59 : vector<1x1x128xf32> to vector<1x128xf32>
    %61 = vector.broadcast %60 : vector<1x128xf32> to vector<8x128xf32>
    %62 = arith.addf %58, %61 : vector<8x128xf32>
    %c0_37 = arith.constant 0 : index
    %c0_38 = arith.constant 0 : index
    %63 = vector.load %arg6[%c0_37, %c0_38] : memref<8x128xf32, #tpu.memory_space<vmem>>, vector<8x128xf32>
    tpu.vector_store %arg6[%c0_37, %c0_38], %62 {strides = array<i32>} : memref<8x128xf32, #tpu.memory_space<vmem>>, vector<8x128xf32>,
    %64 = tpu.weird %62 : vector<8x128xf32> -> vector<8x128xi1>
    %cst_39 = arith.constant dense<true> : vector<8x128xi1>
    %65 = arith.xori %64, %cst_39 : vector<8x128xi1>
    %cst_40 = arith.constant dense<true> : vector<8x128xi1>
    %66 = arith.xori %65, %cst_40 : vector<8x128xi1>
    %67 = vector.broadcast %5 : vector<8x1xi1> to vector<8x128xi1>
    %68 = arith.andi %66, %67 : vector<8x128xi1>
    %cst_41 = arith.constant 1.000000e+00 : f32
    %cst_42 = arith.constant 0.000000e+00 : f32
    %69 = vector.broadcast %cst_41 : f32 to vector<8x128xf32>
    %70 = vector.broadcast %cst_42 : f32 to vector<8x128xf32>
    %71 = arith.select %68, %69, %70 : vector<8x128xi1>, vector<8x128xf32>
    %72 = vector.shape_cast %71 : vector<8x128xf32> to vector<1x8x128xf32>
    %cst_43 = arith.constant dense<0xFF800000> : vector<1xf32>
    %73 = vector.multi_reduction <maximumf>, %72, %cst_43 [1, 2] : vector<1x8x128xf32> to vector<1xf32>
    %74 = vector.shape_cast %73 : vector<1xf32> to vector<1x1x1xf32>
    %75 = vector.extract %74[0, 0, 0] : f32 from vector<1x1x1xf32>
    %cst_44 = arith.constant 0.000000e+00 : f32
    %76 = arith.cmpf ogt, %75, %cst_44 : f32
    %77 = arith.ori %53, %76 : i1
    %78 = arith.extui %77 : i1 to i32
    %79 = arith.sitofp %78 : i32 to f32
    %80 = vector.broadcast %79 : f32 to vector<1x1x128xf32>
    %c0_45 = arith.constant 0 : index
    %c0_46 = arith.constant 0 : index
    %c0_47 = arith.constant 0 : index
    %81 = vector.load %arg7[%c0_45, %c0_46, %c0_47] : memref<1x1x128xf32, #tpu.memory_space<vmem>>, vector<1x1x128xf32>
    tpu.vector_store %arg7[%c0_45, %c0_46, %c0_47], %80 {strides = array<i32>} : memref<1x1x128xf32, #tpu.memory_space<vmem>>, vector<1x1x128xf32>,
    return
  }
  func.func @transform_0(%arg0: i32) -> (i32, i32) {
    %c0_i32 = arith.constant 0 : i32
    %c0_i32_0 = arith.constant 0 : i32
    return %arg0, %c0_i32 : i32, i32
  }
  func.func @transform_1(%arg0: i32) -> (i32, i32, i32) {
    %c0_i32 = arith.constant 0 : i32
    %c0_i32_0 = arith.constant 0 : i32
    %c0_i32_1 = arith.constant 0 : i32
    %c0_i32_2 = arith.constant 0 : i32
    return %c0_i32, %c0_i32_0, %c0_i32_1 : i32, i32, i32
  }
  func.func @transform_2(%arg0: i32) -> (i32, i32, i32) {
    %c0_i32 = arith.constant 0 : i32
    %c0_i32_0 = arith.constant 0 : i32
    %c0_i32_1 = arith.constant 0 : i32
    %c0_i32_2 = arith.constant 0 : i32
    return %c0_i32, %c0_i32_0, %c0_i32_1 : i32, i32, i32
  }
  func.func @transform_3(%arg0: i32) -> (i32, i32) {
    %c0_i32 = arith.constant 0 : i32
    %c0_i32_0 = arith.constant 0 : i32
    return %arg0, %c0_i32 : i32, i32
  }
  func.func @transform_4(%arg0: i32) -> (i32, i32) {
    %c0_i32 = arith.constant 0 : i32
    %c0_i32_0 = arith.constant 0 : i32
    return %arg0, %c0_i32 : i32, i32
  }
  func.func @transform_5(%arg0: i32) -> (i32, i32) {
    %c0_i32 = arith.constant 0 : i32
    %c0_i32_0 = arith.constant 0 : i32
    return %arg0, %c0_i32 : i32, i32
  }
  func.func @transform_6(%arg0: i32) -> (i32, i32, i32) {
    %c0_i32 = arith.constant 0 : i32
    %c0_i32_0 = arith.constant 0 : i32
    %c0_i32_1 = arith.constant 0 : i32
    return %arg0, %c0_i32, %c0_i32_0 : i32, i32, i32
  }
}

</mosaic_0001>

<bundles_post_ra>
// kernel: _forward.1
= control target key start
LH: loop header
LB: loop body
LE: loop exit
PB: predicated region body
PF: predicated region fallthrough
CT: control target
= control target key end

     0   :  { %12 = vsyncpa [#allocation3], 0  ;;  %s994_s0 = inlined_call_operand.vmem [shape: f32[2,384], index: 0, kind: input, shape index: {}]   ;;  %s995_s1 = inlined_call_operand.hbm [shape: bf16[3,128,128], index: 1, kind: input, shape index: {}]   ;;  %s996_s2 = inlined_call_operand.vmem [shape: f32[3,1,128], index: 2, kind: input, shape index: {}]   ;;  %s997_s3 = inlined_call_operand.hbm [shape: f32[2,128], index: 3, kind: output, shape index: {0}]   ;;  %s998_s4 = inlined_call_operand.hbm [shape: f32[2,128], index: 4, kind: output, shape index: {1}]   ;;  %s999_s5 = inlined_call_operand.hbm [shape: f32[2,128], index: 5, kind: output, shape index: {2}]   ;;  %s1000_s6 = inlined_call_operand.vmem [shape: f32[1,1,128], index: 6, kind: output, shape index: {3}]  }
   0x1   :  { %13 = vsyncpa [#allocation4], 0 }
   0x2   :  { %14 = vsyncpa [#allocation7], 0  ;;  %s818_s21 = smov [#allocation2]   ;;  %s724_s25 = scalar_lea.hbm %s995_s1, 3072 }
   0x3   :  { %s22_s22 = sshll.u32 %s818_s21, 4  ;;  %p725_p0 = scmp.ne.s32.totalorder %s995_s1, %s724_s25  ;;  %s23_s22 = int_to_ptr.vmem [resolvable:$true] %s22_s22 }
   0x4   :  { %p728_p1 = scmp.lt.u32.totalorder %s724_s25, %s995_s1 }
   0x6   :  { %p730_p2 = pnand %p728_p1, %p725_p0 }
   0x8   :  { %733 = shalt.err (!%p730_p2)
}
   0x9   :  { %s734_s30 = scalar_lea.vmem %s23_s22, 3072  ;;  %p739_p4 = scmp.lt.s32.totalorder %s23_s22, %s23_s22 }
   0xa   :  { %p735_p3 = scmp.ne.s32.totalorder %s23_s22, %s734_s30  ;;  %p740_p5 = scmp.lt.s32.totalorder %s734_s30, %s734_s30 }
   0xc   :  { %p741_p6 = por %p740_p5, %p739_p4 }
   0xe   :  { %p742_p7 = pnand %p741_p6, %p735_p3 }
  0x10   :  { %745 = shalt.err (!%p742_p7)
}
  0x11   :  { %s819_s7 = smov 64   ;;  %s820_s8 = smov 4  }
  0x12   :  { %28 = dma.hbm_to_vmem [thread:$0]  %s995_s1, 3072, %s23_s22, [#allocation3], %s819_s7, %s819_s7, %s820_s8  }
  0x13   :  { %812 = dma.done.wait [#allocation3], 3072  }
  0x14   :  { %813 = vsyncadd [#allocation3], 4294964224  ;;  %v821_v0 = vmov 0.0   ;;  %vm822_vm0 = vmmov 0   ;;  %v694_v1 = vld [vmem:[#allocation2] sm:$0xff]   ;;  %v695_v2 = vld [vmem:[#allocation2 + $0x8] sm:$0xff]   ;;  %v35_v7 = vlaneseq }
  0x15   :  { %617 = vmatprep.subr.bf16.mxu0 %v821_v0  ;;  %637 = vmatprep.subr.bf16.mxu1 %v821_v0  ;;  %v696_v3 = vld [vmem:[#allocation2 + $0x40] sm:$0xff]   ;;  %v698_v4 = vld [vmem:[#allocation2 + $0x48] sm:$0xff]   ;;  %v697_v5 = vld [vmem:[#allocation2 + $0x10] sm:$0xff]   ;;  %v823_v8 = vmov 1983009808  }
  0x16   :  { %633 = vmatprep.mubr.msk.bf16.mxu0 %vm822_vm0, %v821_v0  ;;  %653 = vmatprep.mubr.msk.bf16.mxu1 %vm822_vm0, %v821_v0  ;;  %v700_v6 = vld [vmem:[#allocation2 + $0x50] sm:$0xff]   ;;  %v52_v9 = vunpack.c.l.s4 %v823_v8  ;;  %v699_v10 = vld [vmem:[#allocation2 + $0x18] sm:$0xff]   ;;  %v888_v12 = vshrl.u32 %v35_v7, 7  ;;  %v701_v14 = vld [vmem:[#allocation2 + $0x20] sm:$0xff]  }
  0x17   :  { %618 = vmatpush3.bf16.msra.mxu0 %v694_v1  ;;  %638 = vmatpush3.bf16.msra.mxu1 %v696_v3  ;;  %v702_v11 = vld [vmem:[#allocation2 + $0x58] sm:$0xff]   ;;  %v704_v15 = vld [vmem:[#allocation2 + $0x60] sm:$0xff]   ;;  %v703_v17 = vld [vmem:[#allocation2 + $0x28] sm:$0xff]  }
  0x18   :  { %619 = vmatprep.subr.bf16.mxu0 %v821_v0  ;;  %639 = vmatprep.subr.bf16.mxu1 %v821_v0  ;;  %v53_v13 = vunpack.c.0.s8 %v52_v9  ;;  %v709_v16 = vld [vmem:[%s994_s0] ss:$6 sps:$4 sm:$0x33]   ;;  %v710_v18 = vld [vmem:[%s994_s0 + $0xc] ss:$6 sps:$4 sm:$0x33]  }
  0x19   :  { %v706_v20 = vld [vmem:[#allocation2 + $0x68] sm:$0xff]   ;;  %v705_v22 = vld [vmem:[#allocation2 + $0x30] sm:$0xff]   ;;  %v707_v30 = vld [vmem:[#allocation2 + $0x38] sm:$0xff]   ;;  %vm40_vm1 = vcmp.lt.s32.totalorder %v888_v12, 2 }
  0x1a   :  { %v56_v19 = vsub.s32 %v53_v13, %v888_v12  ;;  %v713_v21 = vld [vmem:[%s994_s0 + $0x2] ss:$6 sps:$4 sm:$0x33]   ;;  %v714_v25 = vld [vmem:[%s994_s0 + $0xe] ss:$6 sps:$4 sm:$0x33]  }
  0x1b   :  { %620 = vmatpush3.bf16.msra.mxu0 %v695_v2  ;;  %640 = vmatpush3.bf16.msra.mxu1 %v698_v4  ;;  %v708_v28 = vld [vmem:[#allocation2 + $0x70] sm:$0xff]   ;;  %v711_v31 = vld [vmem:[#allocation2 + $0x78] sm:$0xff]   ;;  %v712_v34 = vld [vmem:[#allocation2 + $0x80] sm:$0xff]  }
  0x1c   :  { %621 = vmatprep.subr.bf16.mxu0 %v821_v0  ;;  %641 = vmatprep.subr.bf16.mxu1 %v821_v0  ;;  %v57_v23 = vrot.slane %v709_v16, %v56_v19  ;;  %v64_v24 = vrot.slane %v710_v18, %v56_v19  ;;  %v211_v26 = vrot.slane %v713_v21, %v56_v19  ;;  %v715_v36 = vld [vmem:[#allocation2 + $0x88] sm:$0xff]   ;;  %v716_v37 = vld [vmem:[#allocation2 + $0x90] sm:$0xff]   ;;  %v717_v38 = vld [vmem:[#allocation2 + $0x98] sm:$0xff]  }
  0x1d   :  { %v218_v27 = vrot.slane %v714_v25, %v56_v19  ;;  %v718_v39 = vld [vmem:[#allocation2 + $0xa0] sm:$0xff]   ;;  %v723_v41 = vld [vmem:[%s994_s0 + $0x10] ss:$6 sps:$4 sm:$0x33]   ;;  %v719_v42 = vld [vmem:[#allocation2 + $0xa8] sm:$0xff]  }
  0x1e   :  { %v65_v29 = vcombine.low %v57_v23, %v64_v24  ;;  %v722_v40 = vld [vmem:[%s994_s0 + $0x4] ss:$6 sps:$4 sm:$0x33]   ;;  %v373_v44 = vrot.slane %v723_v41, %v56_v19  ;;  %v720_v45 = vld [vmem:[#allocation2 + $0xb0] sm:$0xff]   ;;  %v721_v47 = vld [vmem:[#allocation2 + $0xb8] sm:$0xff]  }
  0x1f   :  { %622 = vmatpush3.bf16.msra.mxu0 %v697_v5  ;;  %642 = vmatpush3.bf16.msra.mxu1 %v700_v6  ;;  %v219_v32 = vcombine.low %v211_v26, %v218_v27  ;;  %v366_v43 = vrot.slane %v722_v40, %v56_v19  ;;  %v561_v49 = vld [vmem:[%s996_s2] ss:$0 sm:$0xff]  ;;  %v571_v51 = vld [vmem:[%s996_s2 + $0x1] ss:$0 sm:$0xff]  ;;  %v581_v63 = vld [vmem:[%s996_s2 + $0x2] ss:$0 sm:$0xff] }
  0x20   :  { %623 = vmatprep.subr.bf16.mxu0 %v821_v0  ;;  %643 = vmatprep.subr.bf16.mxu1 %v821_v0  ;;  %v67_v33 = vpack.c.bf16 %v65_v29, %v65_v29 }
  0x21   :  { %v221_v35 = vpack.c.bf16 %v219_v32, %v219_v32  ;;  %v374_v46 = vcombine.low %v366_v43, %v373_v44 }
  0x23   :  { %624 = vmatpush3.bf16.msra.mxu0 %v699_v10  ;;  %644 = vmatpush3.bf16.msra.mxu1 %v702_v11  ;;  %v376_v48 = vpack.c.bf16 %v374_v46, %v374_v46 }
  0x24   :  { %625 = vmatprep.subr.bf16.mxu0 %v821_v0  ;;  %645 = vmatprep.subr.bf16.mxu1 %v821_v0 }
  0x27   :  { %626 = vmatpush3.bf16.msra.mxu0 %v701_v14  ;;  %646 = vmatpush3.bf16.msra.mxu1 %v704_v15 }
  0x28   :  { %627 = vmatprep.subr.bf16.mxu0 %v821_v0  ;;  %647 = vmatprep.subr.bf16.mxu1 %v821_v0 }
  0x2b   :  { %628 = vmatpush3.bf16.msra.mxu0 %v703_v17  ;;  %648 = vmatpush3.bf16.msra.mxu1 %v706_v20 }
  0x2c   :  { %629 = vmatprep.subr.bf16.mxu0 %v821_v0  ;;  %649 = vmatprep.subr.bf16.mxu1 %v821_v0 }
  0x2f   :  { %630 = vmatpush3.bf16.msra.mxu0 %v705_v22  ;;  %650 = vmatpush3.bf16.msra.mxu1 %v708_v28 }
  0x30   :  { %631 = vmatprep.subr.bf16.mxu0 %v821_v0  ;;  %651 = vmatprep.subr.bf16.mxu1 %v821_v0 }
  0x33   :  { %632 = vmatpush3.bf16.msra.mxu0 %v707_v30  ;;  %652 = vmatpush3.bf16.msra.mxu1 %v711_v31 }
  0x34   :  { %657 = vmatprep.subr.bf16.mxu0 %v821_v0 }
  0x36   :  { %634 = vmatmul.mubr.bf16.vlgmr.msra.gmra.mrb[0].mxu0 %v67_v33  ;;  %654 = vmatmul.mubr.bf16.vlgmr.msra.gmra.mrb[0].mxu1 %v221_v35 }
  0x37   :  { %658 = vmatpush3.bf16.msra.mxu0 %v712_v34  ;;  %673 = vmatprep.mubr.msk.bf16.mxu0 %vm822_vm0, %v821_v0 }
  0x38   :  { %659 = vmatprep.subr.bf16.mxu0 %v821_v0 }
  0x3b   :  { %660 = vmatpush3.bf16.msra.mxu0 %v715_v36 }
  0x3c   :  { %661 = vmatprep.subr.bf16.mxu0 %v821_v0 }
  0x3f   :  { %662 = vmatpush3.bf16.msra.mxu0 %v716_v37 }
  0x40   :  { %663 = vmatprep.subr.bf16.mxu0 %v821_v0 }
  0x43   :  { %664 = vmatpush3.bf16.msra.mxu0 %v717_v38 }
  0x44   :  { %665 = vmatprep.subr.bf16.mxu0 %v821_v0 }
  0x47   :  { %666 = vmatpush3.bf16.msra.mxu0 %v718_v39 }
  0x48   :  { %667 = vmatprep.subr.bf16.mxu0 %v821_v0 }
  0x4b   :  { %668 = vmatpush3.bf16.msra.mxu0 %v719_v42 }
  0x4c   :  { %669 = vmatprep.subr.bf16.mxu0 %v821_v0 }
  0x4f   :  { %670 = vmatpush3.bf16.msra.mxu0 %v720_v45 }
  0x50   :  { %671 = vmatprep.subr.bf16.mxu0 %v821_v0 }
  0x53   :  { %672 = vmatpush3.bf16.msra.mxu0 %v721_v47 }
  0x56   :  { %674 = vmatmul.mubr.bf16.vlgmr.msra.gmra.mrb[4].mxu0 %v376_v48 }
 0x109   :  { %v173_v50 = vpop.f32.mrb[0].mxu0  ;;  %v329_v55 = vpop.f32.mrb[0].mxu1 }
 0x10a   :  { %v174_v52 = vadd.f32 %v561_v49, %v173_v50  ;;  %v635_v53 = vpop.f32.mrb[1].mxu0  ;;  %v330_v57 = vadd.f32 %v571_v51, %v329_v55  ;;  %v655_v58 = vpop.f32.mrb[1].mxu1 }
 0x10b   :  { %v176_v54 = vpop.f32.mrb[2].mxu0  ;;  %v332_v59 = vpop.f32.mrb[2].mxu1 }
 0x10c   :  { %179 = vst [vmem:[#allocation5] sm:$0xff] %v174_v52  ;;  %v636_v56 = vpop.f32.mrb[3].mxu0  ;;  %vm180_vm2 = vweird.f32 %v174_v52  ;;  %335 = vst [vmem:[#allocation6] sm:$0xff] %v330_v57  ;;  %vm336_vm4 = vweird.f32 %v330_v57  ;;  %v656_v61 = vpop.f32.mrb[3].mxu1 }
 0x10d   :  { %vm183_vm3 = vmand %vm180_vm2, %vm40_vm1 }
 0x10e   :  { %v184_v60 = vsel %vm183_vm3, 1.0, %v821_v0  ;;  %vm337_vm5 = vmand %vm336_vm4, %vm40_vm1 }
 0x10f   :  { %185 = vmax.xlane.f32.xlu0 %v184_v60  ;;  %v338_v62 = vsel %vm337_vm5, 1.0, %v821_v0 }
 0x113   :  { %339 = vmax.xlane.f32.xlu0 %v338_v62 }
 0x129   :  { %v484_v1 = vpop.f32.mrb[4].mxu0 }
 0x12a   :  { %v485_v2 = vadd.f32 %v581_v63, %v484_v1  ;;  %v675_v3 = vpop.f32.mrb[5].mxu0 }
 0x12b   :  { %v487_v4 = vpop.f32.mrb[6].mxu0 }
 0x12c   :  { %490 = vst [vmem:[#allocation8] sm:$0xff] %v485_v2  ;;  %v676_v5 = vpop.f32.mrb[7].mxu0  ;;  %vm491_vm6 = vweird.f32 %v485_v2 }
 0x12d   :  { %vm492_vm7 = vmand %vm491_vm6, %vm40_vm1 }
 0x12e   :  { %v493_v6 = vsel %vm492_vm7, 1.0, %v821_v0 }
 0x12f   :  { %494 = vmax.xlane.f32.xlu1 %v493_v6 }
 0x19c   :  { %v186_v7 = vpop.xlane.xlu0 %185 }
 0x19d   :  { %v187_v8 = vrot.slane %v186_v7, 4 }
 0x19f   :  { %v188_v9 = vmax.f32 %v186_v7, %v187_v8 }
 0x1a0   :  { %v340_v10 = vpop.xlane.xlu0 %339 }
 0x1a1   :  { %v189_v11 = vrot.slane %v188_v9, 2  ;;  %v341_v13 = vrot.slane %v340_v10, 4 }
 0x1a3   :  { %v342_v14 = vmax.f32 %v340_v10, %v341_v13  ;;  %v190_v15 = vmax.f32 %v188_v9, %v189_v11 }
 0x1a5   :  { %v343_v16 = vrot.slane %v342_v14, 2  ;;  %v191_v17 = vrot.slane %v190_v15, 1 }
 0x1a7   :  { %v344_v18 = vmax.f32 %v342_v14, %v343_v16  ;;  %v192_v19 = vmax.f32 %v190_v15, %v191_v17 }
 0x1a9   :  { %677 = vpush %v192_v19  ;;  %v345_v20 = vrot.slane %v344_v18, 1 }
 0x1ab   :  { %v346_v21 = vmax.f32 %v344_v18, %v345_v20 }
 0x1ad   :  { %679 = vpush %v346_v21 }
 0x1bc   :  { %v495_v12 = vpop.xlane.xlu1 %494 }
 0x1bd   :  { %v496_v22 = vrot.slane %v495_v12, 4 }
 0x1bf   :  { %v497_v0 = vmax.f32 %v495_v12, %v496_v22 }
 0x1c1   :  { %v498_v23 = vrot.slane %v497_v0, 2 }
 0x1c3   :  { %v499_v24 = vmax.f32 %v497_v0, %v498_v23 }
 0x1c5   :  { %v500_v25 = vrot.slane %v499_v24, 1 }
 0x1c7   :  { %v501_v26 = vmax.f32 %v499_v24, %v500_v25 }
 0x1c9   :  { %681 = vpush %v501_v26 }
 0x1da   :  { %s678_s2 = spop %677 }
 0x1db   :  { %p194_p9 = scmp.gt.f32.partialorder %s678_s2, 0.0 }
 0x1de   :  { %s680_s27 = spop %679 }
 0x1df   :  { %p348_p8 = scmp.gt.f32.partialorder %s680_s27, 0.0 }
 0x1e1   :  { %p349_p10 = por %p348_p8, %p194_p9 }
 0x1fa   :  { %s682_s28 = spop %681 }
 0x1fb   :  { %p503_p11 = scmp.gt.f32.partialorder %s682_s28, 0.0 }
 0x1fd   :  { %p504_p12 = por %p503_p11, %p349_p10 }
 0x1ff   :  { %s505_s29 = scalar_select %p504_p12, 1, 0 }
 0x201   :  { %s506_s30 = scvt.s32.f32 %s505_s29 }
 0x203   :  { %v507_v27 = vstv %s506_s30 }
 0x204   :  { %508 = vst [vmem:[%s1000_s6] sm:$0x1] %v507_v27 }
 0x205   :  { %513 = vsyncadd [#allocation4], 96  ;;  %s824_s9 = smov [#allocation5]  }
 0x206   :  { %s514_s10 = sshll.u32 %s824_s9, 4  ;;  %s515_s10 = int_to_ptr.vmem [resolvable:$true] %s514_s10 }
 0x207   :  { %s746_s1 = scalar_lea.vmem %s515_s10, 32  ;;  %s750_s11 = scalar_lea.vmem %s515_s10, 128 }
 0x208   :  { %p747_p13 = scmp.ne.s32.totalorder %s515_s10, %s746_s1  ;;  %p751_p0 = scmp.lt.s32.totalorder %s515_s10, %s515_s10 }
 0x209   :  { %p752_p1 = scmp.lt.s32.totalorder %s750_s11, %s746_s1 }
 0x20b   :  { %p753_p2 = por %p752_p1, %p751_p0 }
 0x20d   :  { %p754_p3 = pnand %p753_p2, %p747_p13 }
 0x20f   :  { %757 = shalt.err (!%p754_p3)
}
 0x210   :  { %s758_s14 = scalar_lea.hbm %s997_s3, 32 }
 0x211   :  { %p759_p4 = scmp.ne.s32.totalorder %s997_s3, %s758_s14  ;;  %p762_p5 = scmp.lt.u32.totalorder %s758_s14, %s997_s3 }
 0x213   :  { %p764_p6 = pnand %p762_p5, %p759_p4 }
 0x215   :  { %767 = shalt.err (!%p764_p6)
}
 0x216   :  { %s825_s18 = smov 32   ;;  %s826_s19 = smov 2  }
 0x217   :  { %520 = dma.vmem_to_hbm [thread:$0]  %s515_s10, 32, %s997_s3, [#allocation4], %s825_s18, %s825_s18, %s826_s19  }
 0x218   :  { %525 = vsyncadd [#allocation7], 96  ;;  %s827_s22 = smov [#allocation6]  }
 0x219   :  { %s526_s0 = sshll.u32 %s827_s22, 4  ;;  %s527_s0 = int_to_ptr.vmem [resolvable:$true] %s526_s0 }
 0x21a   :  { %s768_s23 = scalar_lea.vmem %s527_s0, 32  ;;  %s772_s24 = scalar_lea.vmem %s527_s0, 128 }
 0x21b   :  { %p769_p7 = scmp.ne.s32.totalorder %s527_s0, %s768_s23  ;;  %p773_p8 = scmp.lt.s32.totalorder %s527_s0, %s527_s0 }
 0x21c   :  { %p774_p9 = scmp.lt.s32.totalorder %s772_s24, %s768_s23 }
 0x21e   :  { %p775_p10 = por %p774_p9, %p773_p8 }
 0x220   :  { %p776_p11 = pnand %p775_p10, %p769_p7 }
 0x222   :  { %779 = shalt.err (!%p776_p11)
}
 0x223   :  { %s780_s2 = scalar_lea.hbm %s998_s4, 32 }
 0x224   :  { %p781_p12 = scmp.ne.s32.totalorder %s998_s4, %s780_s2  ;;  %p784_p13 = scmp.lt.u32.totalorder %s780_s2, %s998_s4 }
 0x226   :  { %p786_p0 = pnand %p784_p13, %p781_p12 }
 0x228   :  { %789 = shalt.err (!%p786_p0)
}
 0x229   :  { %532 = dma.vmem_to_hbm [thread:$0]  %s527_s0, 32, %s998_s4, [#allocation7], %s825_s18, %s825_s18, %s826_s19  }
 0x22a   :  { %537 = vsyncadd [#allocation7], 96  ;;  %s828_s8 = smov [#allocation8]  }
 0x22b   :  { %s538_s9 = sshll.u32 %s828_s8, 4  ;;  %s539_s9 = int_to_ptr.vmem [resolvable:$true] %s538_s9 }
 0x22c   :  { %s790_s10 = scalar_lea.vmem %s539_s9, 32  ;;  %s794_s1 = scalar_lea.vmem %s539_s9, 128 }
 0x22d   :  { %p791_p1 = scmp.ne.s32.totalorder %s539_s9, %s790_s10  ;;  %p795_p2 = scmp.lt.s32.totalorder %s539_s9, %s539_s9 }
 0x22e   :  { %p796_p3 = scmp.lt.s32.totalorder %s794_s1, %s790_s10 }
 0x230   :  { %p797_p4 = por %p796_p3, %p795_p2 }
 0x232   :  { %p798_p5 = pnand %p797_p4, %p791_p1 }
 0x234   :  { %801 = shalt.err (!%p798_p5)
}
 0x235   :  { %s802_s13 = scalar_lea.hbm %s999_s5, 32 }
 0x236   :  { %p803_p6 = scmp.ne.s32.totalorder %s999_s5, %s802_s13  ;;  %p806_p7 = scmp.lt.u32.totalorder %s802_s13, %s999_s5 }
 0x238   :  { %p808_p8 = pnand %p806_p7, %p803_p6 }
 0x23a   :  { %811 = shalt.err (!%p808_p8)
}
 0x23b   :  { %544 = dma.vmem_to_hbm [thread:$0]  %s539_s9, 32, %s999_s5, [#allocation7], %s825_s18, %s825_s18, %s826_s19  }
 0x23c   :  { %814 = dma.done.wait [#allocation4], 128  }
 0x23d   :  { %815 = vsyncadd [#allocation4], 4294967168 }
 0x23e   :  { %816 = dma.done.wait [#allocation7], 256  }
 0x23f   :  { %817 = vsyncadd [#allocation7], 4294967040 }
 0x240   :  { %558 = vsyncpa [#allocation3], 1 }
 0x241   :  { %559 = vsyncpa [#allocation4], 1 }
 0x242   :  { %560 = vsyncpa [#allocation7], 1 }

</bundles_post_ra>
